<compile_context>
chip_gen: v6e
topology: v6e:2x2x1
jax: 0.10.0
libtpu: 0.0.40
codegen_flags: <defaults>
</compile_context>

<pallas_src>
import jax
import jax.numpy as jnp
from jax.experimental import pallas as pl
from jax.experimental.pallas import tpu as pltpu

_LANE = 128            # TPU lane width (fast axis)
_MAX_BLOCK_ROWS = 512  # 512x128 f32 block = 256 KB/operand: safe on v5e/v6e/v7x


def _mean_metric_kernel(corrects_ref, totals_ref, mean_ref):
    # Pure elementwise: cast + divide (VPU/EUP), single load-divide-store.
    c = corrects_ref[...].astype(jnp.float32)
    t = totals_ref[...].astype(jnp.float32)
    # NOTE: totals == 0 -> inf / nan, same as the PyTorch reference.
    mean_ref[...] = c / t


def mean_metric_epoch(corrects: jax.Array, totals: jax.Array):
    """Epoch branch of _MeanMetric.forward.

    corrects, totals: int32 arrays of shape (classes,).
    Returns (mean, reset_corrects, reset_totals):
      mean   : float32 (classes,)  == corrects / totals
      reset_*: zeroed int32 counters (state after the in-place reset).
    """
    classes = corrects.shape[0]

    # ---- lane-dense (rows, 128) view of the class axis -------------------
    rows = pl.cdiv(classes, _LANE)
    if rows <= 8:
        block_rows = rows                      # single full-extent block
    else:
        block_rows = min(_MAX_BLOCK_ROWS, (rows // 8) * 8)
    rows_padded = pl.cdiv(rows, block_rows) * block_rows
    total_padded = rows_padded * _LANE
    pad = total_padded - classes

    c2 = jnp.pad(corrects, (0, pad)).reshape(rows_padded, _LANE)
    # Pad totals with 1 so padded lanes compute 0/1 = 0.0 instead of NaN.
    t2 = jnp.pad(totals, (0, pad), constant_values=1).reshape(rows_padded, _LANE)

    grid = (rows_padded // block_rows,)
    spec = pl.BlockSpec((block_rows, _LANE), lambda i: (i, 0))

    mean2 = pl.pallas_call(
        _mean_metric_kernel,
        grid=grid,
        in_specs=[spec, spec],
        out_specs=spec,
        out_shape=jax.ShapeDtypeStruct((rows_padded, _LANE), jnp.float32),
        compiler_params=pltpu.CompilerParams(
            # Row axis is independent per block; lets v7x split across its 2 TCs.
            dimension_semantics=("parallel",),
        ),
    )(c2, t2)

    mean = mean2.reshape(total_padded)[:classes]

    # Counter reset (torch: self._corrects *= 0 ; self._totals *= 0).
    # Constant zeros — XLA materializes these for free; no kernel output DMA.
    return mean, jnp.zeros_like(corrects), jnp.zeros_like(totals)


# TODO(synk): get_batch_metric is an abstractmethod in the PyTorch module
# (raises NotImplementedError), so only the epoch-metric branch is implemented.


def _check(classes: int, key) -> None:
    k1, k2 = jax.random.split(key)
    totals = jax.random.randint(k1, (classes,), minval=1, maxval=100, dtype=jnp.int32)
    corrects = jax.random.randint(k2, (classes,), minval=0, maxval=100, dtype=jnp.int32)
    corrects = jnp.minimum(corrects, totals)

    mean, reset_c, reset_t = mean_metric_epoch(corrects, totals)
    jax.block_until_ready((mean, reset_c, reset_t))

    ref_mean = corrects.astype(jnp.float32) / totals.astype(jnp.float32)
    assert mean.shape == (classes,)
    assert jnp.allclose(mean, ref_mean, rtol=1e-6, atol=1e-6)
    assert int(jnp.sum(jnp.abs(reset_c))) == 0
    assert int(jnp.sum(jnp.abs(reset_t))) == 0


if __name__ == "__main__":
    key = jax.random.PRNGKey(0)
    k_small, k_padded = jax.random.split(key)
    # Small class count (single (1,128) lane-dense block).
    _check(8, k_small)
    # Non-multiple-of-128 class count (exercises padding + slicing path).
    _check(300, k_padded)
    print("KERNEL_OK")
</pallas_src>

<mosaic_0001>
module attributes {stable_mosaic.version = 11 : i64} {
  func.func @_mean_metric_kernel(%arg0: i32, %arg1: memref<1x128xi32, #tpu.memory_space<vmem>>, %arg2: memref<1x128xi32, #tpu.memory_space<vmem>>, %arg3: memref<1x128xf32, #tpu.memory_space<vmem>>) attributes {dimension_semantics = [#tpu.dimension_semantics<parallel>], iteration_bounds = array<i64: 1>, scalar_prefetch = 0 : i64, scratch_operands = 0 : i64, tpu.core_type = #tpu.core_type<tc>, window_params = [{transform_indices = @transform_0, window_bounds = array<i64: 1, 128>}, {transform_indices = @transform_1, window_bounds = array<i64: 1, 128>}, {transform_indices = @transform_2, window_bounds = array<i64: 1, 128>}]} {
    %c0 = arith.constant 0 : index
    %c0_0 = arith.constant 0 : index
    %0 = vector.load %arg1[%c0, %c0_0] : memref<1x128xi32, #tpu.memory_space<vmem>>, vector<1x128xi32>
    %1 = arith.sitofp %0 : vector<1x128xi32> to vector<1x128xf32>
    %c0_1 = arith.constant 0 : index
    %c0_2 = arith.constant 0 : index
    %2 = vector.load %arg2[%c0_1, %c0_2] : memref<1x128xi32, #tpu.memory_space<vmem>>, vector<1x128xi32>
    %3 = arith.sitofp %2 : vector<1x128xi32> to vector<1x128xf32>
    %4 = arith.divf %1, %3 : vector<1x128xf32>
    %c0_3 = arith.constant 0 : index
    %c0_4 = arith.constant 0 : index
    %5 = vector.load %arg3[%c0_3, %c0_4] : memref<1x128xf32, #tpu.memory_space<vmem>>, vector<1x128xf32>
    tpu.vector_store %arg3[%c0_3, %c0_4], %4 {strides = array<i32>} : memref<1x128xf32, #tpu.memory_space<vmem>>, vector<1x128xf32>,
    return
  }
  func.func @transform_0(%arg0: i32) -> (i32, i32) {
    %c0_i32 = arith.constant 0 : i32
    %c0_i32_0 = arith.constant 0 : i32
    return %arg0, %c0_i32 : i32, i32
  }
  func.func @transform_1(%arg0: i32) -> (i32, i32) {
    %c0_i32 = arith.constant 0 : i32
    %c0_i32_0 = arith.constant 0 : i32
    return %arg0, %c0_i32 : i32, i32
  }
  func.func @transform_2(%arg0: i32) -> (i32, i32) {
    %c0_i32 = arith.constant 0 : i32
    %c0_i32_0 = arith.constant 0 : i32
    return %arg0, %c0_i32 : i32, i32
  }
}

</mosaic_0001>

<bundles_post_ra>
// kernel: tpu_custom_call.1
= control target key start
LH: loop header
LB: loop body
LE: loop exit
PB: predicated region body
PF: predicated region fallthrough
CT: control target
= control target key end

     0   :  { %7 = vsyncpa [#allocation3], 0  ;;  %s120_s0 = inlined_call_operand.hbm [shape: s32[1,128], index: 0, kind: input, shape index: {}]   ;;  %s121_s1 = inlined_call_operand.vmem [shape: s32[1,128], index: 1, kind: input, shape index: {}]   ;;  %s122_s2 = inlined_call_operand.hbm [shape: f32[1,128], index: 2, kind: output, shape index: {}]  }
   0x1   :  { %8 = vsyncpa [#allocation4], 0  ;;  %s94_s9 = smov [#allocation2]  }
   0x2   :  { %s15_s10 = sshll.u32 %s94_s9, 4  ;;  %s16_s10 = int_to_ptr.vmem [resolvable:$true] %s15_s10 }
   0x3   :  { %s58_s11 = scalar_lea.vmem %s16_s10, 16  ;;  %s62_s12 = scalar_lea.vmem %s16_s10, 32 }
   0x4   :  { %p59_p0 = scmp.ne.s32.totalorder %s16_s10, %s58_s11  ;;  %p63_p1 = scmp.lt.s32.totalorder %s16_s10, %s16_s10 }
   0x5   :  { %p64_p2 = scmp.lt.s32.totalorder %s62_s12, %s58_s11 }
   0x7   :  { %p65_p3 = por %p64_p2, %p63_p1 }
   0x9   :  { %p66_p4 = pnand %p65_p3, %p59_p0 }
   0xb   :  { %69 = shalt.err (!%p66_p4)
}
   0xc   :  { %18 = dma.hbm_to_vmem [thread:$0]  %s120_s0, 16, %s16_s10, [#allocation3]  }
   0xd   :  { %90 = dma.done.wait [#allocation3], 16  }
   0xe   :  { %91 = vsyncadd [#allocation3], 4294967280  ;;  %v26_v0 = vld [vmem:[%s121_s1] sm:$0x1]  ;;  %s95_s17 = smov [#allocation5]  }
   0xf   :  { %v27_v1 = vcvt.s32.f32 %v26_v0  ;;  %v24_v2 = vld [vmem:[#allocation2] sm:$0x1]  ;;  %s37_s18 = sshll.u32 %s95_s17, 4  ;;  %s38_s18 = int_to_ptr.vmem [resolvable:$true] %s37_s18 }
  0x10   :  { %v25_v3 = vcvt.s32.f32 %v24_v2  ;;  %s70_s19 = scalar_lea.vmem %s38_s18, 16  ;;  %s74_s20 = scalar_lea.vmem %s38_s18, 32 }
  0x11   :  { %48 = vrcp.f32 %v27_v1  ;;  %p71_p5 = scmp.ne.s32.totalorder %s38_s18, %s70_s19  ;;  %p75_p6 = scmp.lt.s32.totalorder %s38_s18, %s38_s18 }
  0x12   :  { %p76_p7 = scmp.lt.s32.totalorder %s74_s20, %s70_s19 }
  0x14   :  { %p77_p8 = por %p76_p7, %p75_p6 }
  0x16   :  { %p78_p9 = pnand %p77_p8, %p71_p5 }
  0x1e   :  { %v49_v4 = vpop.eup %48 }
  0x1f   :  { %v29_v5 = vmul.f32 %v49_v4, %v25_v3 }
  0x21   :  { %30 = vst [vmem:[#allocation5] sm:$0x1] %v29_v5 }
  0x22   :  { %81 = shalt.err (!%p78_p9)
}
  0x23   :  { %40 = dma.vmem_to_hbm [thread:$0]  %s38_s18, 16, %s122_s2, [#allocation4]  }
  0x24   :  { %92 = dma.done.wait [#allocation4], 16  }
  0x25   :  { %93 = vsyncadd [#allocation4], 4294967280 }
  0x26   :  { %44 = vsyncpa [#allocation3], 1 }
  0x27   :  { %45 = vsyncpa [#allocation4], 1 }

</bundles_post_ra>
